<compile_context>
chip_gen: v6e
topology: v6e:2x2x1
jax: 0.10.0
libtpu: 0.0.40
codegen_flags: <defaults>
</compile_context>

<pallas_src>
import math

import jax
import jax.numpy as jnp
from jax.experimental import pallas as pl
from jax.experimental.pallas import tpu as pltpu

# ---------------- model hyper-parameters (small, consistent with the module) -----------
L = 8            # sequence length
N = 2            # batch size
D_MODEL = 32     # d_model
NHEAD = 4        # number of attention heads
HEAD_DIM = D_MODEL // NHEAD
DFF = 64         # dim_feedforward
EPS = 1e-5       # layer_norm_eps

# Row offsets inside the packed (SLAB_ROWS, 128) parameter slab (all multiples of 8).
R_WIN  = 0                      # (32, 128)  in-proj weight^T,  cols 0:96 real
R_WOUT = R_WIN + D_MODEL        # (32, 128)  out-proj weight^T, cols 0:32 real
R_W1   = R_WOUT + D_MODEL       # (32, 128)  linear1 weight^T,  cols 0:64 real
R_W2   = R_W1 + D_MODEL         # (64, 128)  linear2 weight^T,  cols 0:32 real
R_M    = R_W2 + DFF             # (32, 128)  scaled head indicator, cols 0:4 real
R_MT   = R_M + D_MODEL          # (8, 128)   head expander, rows 0:4 / cols 0:32 real
R_SELT = R_MT + 8               # (16, 128)  row -> batch selector, cols 0:2 real
R_SEL  = R_SELT + L * N         # (8, 128)   batch -> rows selector, rows 0:2 / cols 0:16 real
R_VEC  = R_SEL + 8              # (8, 128)   b_in, b_out, ln1_g, ln1_b, b1, b2, ln2_g, ln2_b
SLAB_ROWS = R_VEC + 8           # = 232


def _decoder_layer_kernel(x_ref,   # (L*N, E) activations, flat l-major rows (r = l*N + n)
                          w_ref,   # (SLAB_ROWS, 128) packed parameter slab
                          o_ref):  # (L*N, E)
    E, H = D_MODEL, NHEAD
    R = L * N

    x = x_ref[...]                                          # (16, 32)

    # ---- packed parameter slab views (static, sublane-aligned row ranges) ----
    w_in  = w_ref[R_WIN:R_WIN + E, :]                       # (32, 128)
    w_out = w_ref[R_WOUT:R_WOUT + E, :]                     # (32, 128)
    w1    = w_ref[R_W1:R_W1 + E, :]                         # (32, 128)
    w2    = w_ref[R_W2:R_W2 + DFF, :]                       # (64, 128)
    Mh    = w_ref[R_M:R_M + E, :]                           # (32, 128) scaled indicator
    MTh   = w_ref[R_MT:R_MT + 2 * H, :]                     # (8, 128)  head expander
    SelT  = w_ref[R_SELT:R_SELT + R, :][:, 0:N]             # (16, 2)   row r -> batch r % N
    Sel   = w_ref[R_SEL:R_SEL + 8, :][0:N, 0:R]             # (2, 16)   batch n -> its rows
    vecs  = w_ref[R_VEC:R_VEC + 8, :]                       # (8, 128)
    b_in  = vecs[0:1, :]                                    # (1, 128), pad lanes are 0
    b_out = vecs[1:2, 0:E]
    ln1_g = vecs[2:3, 0:E]
    ln1_b = vecs[3:4, 0:E]
    b1    = vecs[4:5, :]                                    # (1, 128), pad lanes are 0
    b2    = vecs[5:6, 0:E]
    ln2_g = vecs[6:7, 0:E]
    ln2_b = vecs[7:8, 0:E]

    # ---- fused QKV projection: one lane-dense (16, 128) tile ----
    qkv = jnp.dot(x, w_in, preferred_element_type=jnp.float32) + b_in

    q0 = qkv[0:N, 0:E]                                      # (2, 32) queries at time step 0
    k  = qkv[:, E:2 * E]                                    # (16, 32)
    v  = qkv[:, 2 * E:3 * E]                                # (16, 32)

    # Broadcast q0 of the matching batch to every (l, n) row via a selector matmul
    # (row r belongs to batch r % N); MXU push instead of a gather / tile relayout.
    q_rows = jnp.dot(SelT, q0, preferred_element_type=jnp.float32)           # (16, 32)

    # Per-head scores: s[r, h] = scale * <k_r, q0_{r%N}> restricted to head h.
    # Mh already carries the 1/sqrt(head_dim) scale; cols 4:8 are zero padding.
    s = jnp.dot(k * q_rows, Mh, preferred_element_type=jnp.float32)[:, 0:2 * H]   # (16, 8)
    # Global max is constant over the softmax axis -> softmax result unchanged.
    p = jnp.exp(s - jnp.max(s))                                                   # (16, 8)
    # Expand per-head probabilities across their head lanes (pad rows of MTh are zero).
    pe = jnp.dot(p, MTh, preferred_element_type=jnp.float32)[:, 0:E]              # (16, 32)
    # Per-batch reductions over the sequence as selector matmuls (both batches at once).
    ctx_un = jnp.dot(Sel, pe * v, preferred_element_type=jnp.float32)             # (2, 32)
    den    = jnp.dot(Sel, pe, preferred_element_type=jnp.float32)                 # (2, 32)
    ctx = ctx_un * pl.reciprocal(den, approx=True)                                # (2, 32)

    attn0 = jnp.dot(ctx, w_out, preferred_element_type=jnp.float32)[:, 0:E] + b_out   # (2, 32)

    # Residual: attn_output[0] broadcast over the whole sequence (deprecated-module quirk).
    x1 = x + jnp.dot(SelT, attn0, preferred_element_type=jnp.float32)             # (16, 32)

    # ---- norm1 (LayerNorm over the true E=32 lanes, biased variance) ----
    m1 = jnp.mean(x1, axis=-1, keepdims=True)
    c1 = x1 - m1
    xn1 = c1 * jax.lax.rsqrt(jnp.mean(c1 * c1, axis=-1, keepdims=True) + EPS) * ln1_g + ln1_b

    # ---- feed-forward (relu; dropouts identity in eval mode) ----
    h1 = jnp.maximum(jnp.dot(xn1, w1, preferred_element_type=jnp.float32) + b1, 0.0)   # (16, 128)
    h2 = jnp.dot(h1[:, 0:DFF], w2, preferred_element_type=jnp.float32)[:, 0:E] + b2    # (16, 32)
    x2 = xn1 + h2

    # ---- norm2 ----
    m2 = jnp.mean(x2, axis=-1, keepdims=True)
    c2 = x2 - m2
    o_ref[...] = c2 * jax.lax.rsqrt(jnp.mean(c2 * c2, axis=-1, keepdims=True) + EPS) * ln2_g + ln2_b


def _pad128(mat, rows):
    """Zero-pad a 2-D matrix into the top-left corner of a (rows, 128) f32 tile."""
    mat = jnp.asarray(mat, jnp.float32)
    r, c = mat.shape
    out = jnp.zeros((rows, 128), jnp.float32)
    return out.at[:r, :c].set(mat)


def prepare_params(params):
    """One-time host-side prep: pre-transpose, lane-pad and pack everything into one slab."""
    scale = 1.0 / math.sqrt(HEAD_DIM)
    e = jnp.arange(D_MODEL)
    h = jnp.arange(NHEAD)
    Mh = (e[:, None] // HEAD_DIM == h[None, :]).astype(jnp.float32) * scale   # (E, H), scaled
    MTh = (h[:, None] == e[None, :] // HEAD_DIM).astype(jnp.float32)          # (H, E)
    r = jnp.arange(L * N)
    n = jnp.arange(N)
    SelT = (r[:, None] % N == n[None, :]).astype(jnp.float32)                 # (L*N, N)
    Sel = SelT.T                                                              # (N, L*N)

    vec_list = [params["b_in"], params["b_out"], params["ln1_g"], params["ln1_b"],
                params["b1"], params["b2"], params["ln2_g"], params["ln2_b"]]
    vecs = jnp.concatenate(
        [_pad128(jnp.asarray(v, jnp.float32).reshape(1, -1), 1) for v in vec_list], axis=0)

    slab = jnp.concatenate([
        _pad128(jnp.asarray(params["w_in"], jnp.float32).T, D_MODEL),   # rows   0: 32
        _pad128(jnp.asarray(params["w_out"], jnp.float32).T, D_MODEL),  # rows  32: 64
        _pad128(jnp.asarray(params["w1"], jnp.float32).T, D_MODEL),     # rows  64: 96
        _pad128(jnp.asarray(params["w2"], jnp.float32).T, DFF),         # rows  96:160
        _pad128(Mh, D_MODEL),                                           # rows 160:192
        _pad128(MTh, 8),                                                # rows 192:200
        _pad128(SelT, L * N),                                           # rows 200:216
        _pad128(Sel, 8),                                                # rows 216:224
        vecs,                                                           # rows 224:232
    ], axis=0)
    assert slab.shape == (SLAB_ROWS, 128)
    return slab


@jax.jit
def decoder_layer_forward(tgt, slab):
    """tgt: (L, N, E) float32 (PyTorch batch_first=False layout). Returns (L, N, E)."""
    l, n, e = tgt.shape
    x2d = tgt.reshape(l * n, e)          # free contiguous reshape (l-major rows)
    vmem = pl.BlockSpec(memory_space=pltpu.MemorySpace.VMEM)
    out2d = pl.pallas_call(
        _decoder_layer_kernel,
        out_shape=jax.ShapeDtypeStruct((l * n, e), jnp.float32),
        in_specs=[vmem, vmem],
        out_specs=vmem,
    )(x2d, slab)
    return out2d.reshape(l, n, e)        # free contiguous reshape back


def _reference_forward(tgt, params):
    """Pure-JAX reference with identical math (full attention, then take time step 0)."""
    x = jnp.transpose(tgt, (1, 0, 2))                # (N, L, E)
    e = D_MODEL
    hd = e // NHEAD
    qkv = jnp.einsum('nld,fd->nlf', x, params["w_in"]) + params["b_in"]
    q, k, v = qkv[..., :e], qkv[..., e:2 * e], qkv[..., 2 * e:]

    def heads(t):
        return t.reshape(N, L, NHEAD, hd).transpose(0, 2, 1, 3)   # (N, H, L, hd)
    qh, kh, vh = heads(q), heads(k), heads(v)
    s = jnp.einsum('nhqd,nhkd->nhqk', qh, kh) / math.sqrt(hd)
    p = jax.nn.softmax(s, axis=-1)
    o = jnp.einsum('nhqk,nhkd->nhqd', p, vh).transpose(0, 2, 1, 3).reshape(N, L, e)
    attn = jnp.einsum('nld,fd->nlf', o, params["w_out"]) + params["b_out"]
    sa0 = attn[:, 0:1, :]                            # attn_output[0] quirk
    x1 = x + sa0

    def ln(z, g, b):
        m = jnp.mean(z, axis=-1, keepdims=True)
        vv = jnp.mean((z - m) ** 2, axis=-1, keepdims=True)
        return (z - m) * jax.lax.rsqrt(vv + EPS) * g + b

    xn1 = ln(x1, params["ln1_g"], params["ln1_b"])
    h1 = jnp.maximum(jnp.einsum('nld,fd->nlf', xn1, params["w1"]) + params["b1"], 0.0)
    h2 = jnp.einsum('nlf,df->nld', h1, params["w2"]) + params["b2"]
    out = ln(xn1 + h2, params["ln2_g"], params["ln2_b"])
    return jnp.transpose(out, (1, 0, 2))


def init_params(key):
    ks = jax.random.split(key, 8)
    s_in = 1.0 / math.sqrt(D_MODEL)
    s_ff = 1.0 / math.sqrt(DFF)
    return {
        "w_in":  jax.random.uniform(ks[0], (3 * D_MODEL, D_MODEL), jnp.float32, -s_in, s_in),
        "b_in":  jax.random.uniform(ks[1], (1, 3 * D_MODEL), jnp.float32, -s_in, s_in),
        "w_out": jax.random.uniform(ks[2], (D_MODEL, D_MODEL), jnp.float32, -s_in, s_in),
        "b_out": jax.random.uniform(ks[3], (1, D_MODEL), jnp.float32, -s_in, s_in),
        "ln1_g": jnp.ones((1, D_MODEL), jnp.float32),
        "ln1_b": jnp.zeros((1, D_MODEL), jnp.float32),
        "w1":    jax.random.uniform(ks[4], (DFF, D_MODEL), jnp.float32, -s_in, s_in),
        "b1":    jax.random.uniform(ks[5], (1, DFF), jnp.float32, -s_in, s_in),
        "w2":    jax.random.uniform(ks[6], (D_MODEL, DFF), jnp.float32, -s_ff, s_ff),
        "b2":    jax.random.uniform(ks[7], (1, D_MODEL), jnp.float32, -s_ff, s_ff),
        "ln2_g": jnp.ones((1, D_MODEL), jnp.float32),
        "ln2_b": jnp.zeros((1, D_MODEL), jnp.float32),
    }


if __name__ == "__main__":
    key = jax.random.PRNGKey(0)
    k_x, k_p = jax.random.split(key)
    tgt = jax.random.normal(k_x, (L, N, D_MODEL), dtype=jnp.float32)   # (seq, batch, d_model)
    params = init_params(k_p)
    slab = prepare_params(params)                     # one-time weight prep (transpose + pack)

    out = jax.block_until_ready(decoder_layer_forward(tgt, slab))
    ref = jax.block_until_ready(_reference_forward(tgt, params))

    assert out.shape == (L, N, D_MODEL)
    # Tolerance 1e-3 accounts for the approx=True EUP reciprocal in the softmax denominator.
    max_err = float(jnp.max(jnp.abs(out - ref)))
    assert jnp.allclose(out, ref, rtol=1e-3, atol=1e-3), f"mismatch vs reference (max abs err {max_err})"

    # TODO(synk): tgt_mask / tgt_key_padding_mask (optional args) not wired; forward is
    # reproduced for the mask=None path. Dropout layers are identity (eval mode).
    print("KERNEL_OK")
</pallas_src>

<mosaic_0001>
module attributes {stable_mosaic.version = 11 : i64} {
  func.func @_decoder_layer_kernel(%arg0: memref<16x32xf32, #tpu.memory_space<vmem>>, %arg1: memref<232x128xf32, #tpu.memory_space<vmem>>, %arg2: memref<16x32xf32, #tpu.memory_space<vmem>>) attributes {dimension_semantics = [], scalar_prefetch = 0 : i64, scratch_operands = 0 : i64, tpu.core_type = #tpu.core_type<tc>} {
    %c0 = arith.constant 0 : index
    %c0_0 = arith.constant 0 : index
    %0 = vector.load %arg0[%c0, %c0_0] : memref<16x32xf32, #tpu.memory_space<vmem>>, vector<16x32xf32>
    %c0_1 = arith.constant 0 : index
    %c0_2 = arith.constant 0 : index
    %1 = vector.load %arg1[%c0_1, %c0_2] : memref<232x128xf32, #tpu.memory_space<vmem>>, vector<32x128xf32>
    %c32 = arith.constant 32 : index
    %c0_3 = arith.constant 0 : index
    %2 = vector.load %arg1[%c32, %c0_3] : memref<232x128xf32, #tpu.memory_space<vmem>>, vector<32x128xf32>
    %c64 = arith.constant 64 : index
    %c0_4 = arith.constant 0 : index
    %3 = vector.load %arg1[%c64, %c0_4] : memref<232x128xf32, #tpu.memory_space<vmem>>, vector<32x128xf32>
    %c96 = arith.constant 96 : index
    %c0_5 = arith.constant 0 : index
    %4 = vector.load %arg1[%c96, %c0_5] : memref<232x128xf32, #tpu.memory_space<vmem>>, vector<64x128xf32>
    %c160 = arith.constant 160 : index
    %c0_6 = arith.constant 0 : index
    %5 = vector.load %arg1[%c160, %c0_6] : memref<232x128xf32, #tpu.memory_space<vmem>>, vector<32x128xf32>
    %c192 = arith.constant 192 : index
    %c0_7 = arith.constant 0 : index
    %6 = vector.load %arg1[%c192, %c0_7] : memref<232x128xf32, #tpu.memory_space<vmem>>, vector<8x128xf32>
    %c200 = arith.constant 200 : index
    %c0_8 = arith.constant 0 : index
    %7 = vector.load %arg1[%c200, %c0_8] : memref<232x128xf32, #tpu.memory_space<vmem>>, vector<16x128xf32>
    %8 = vector.extract_strided_slice %7 {offsets = [0, 0], sizes = [16, 2], strides = [1, 1]} : vector<16x128xf32> to vector<16x2xf32>
    %c216 = arith.constant 216 : index
    %c0_9 = arith.constant 0 : index
    %9 = vector.load %arg1[%c216, %c0_9] : memref<232x128xf32, #tpu.memory_space<vmem>>, vector<8x128xf32>
    %10 = vector.extract_strided_slice %9 {offsets = [0, 0], sizes = [2, 16], strides = [1, 1]} : vector<8x128xf32> to vector<2x16xf32>
    %c224 = arith.constant 224 : index
    %c0_10 = arith.constant 0 : index
    %11 = vector.load %arg1[%c224, %c0_10] : memref<232x128xf32, #tpu.memory_space<vmem>>, vector<8x128xf32>
    %12 = vector.extract_strided_slice %11 {offsets = [0, 0], sizes = [1, 128], strides = [1, 1]} : vector<8x128xf32> to vector<1x128xf32>
    %13 = vector.extract_strided_slice %11 {offsets = [1, 0], sizes = [1, 32], strides = [1, 1]} : vector<8x128xf32> to vector<1x32xf32>
    %14 = vector.extract_strided_slice %11 {offsets = [2, 0], sizes = [1, 32], strides = [1, 1]} : vector<8x128xf32> to vector<1x32xf32>
    %15 = vector.extract_strided_slice %11 {offsets = [3, 0], sizes = [1, 32], strides = [1, 1]} : vector<8x128xf32> to vector<1x32xf32>
    %16 = vector.extract_strided_slice %11 {offsets = [4, 0], sizes = [1, 128], strides = [1, 1]} : vector<8x128xf32> to vector<1x128xf32>
    %17 = vector.extract_strided_slice %11 {offsets = [5, 0], sizes = [1, 32], strides = [1, 1]} : vector<8x128xf32> to vector<1x32xf32>
    %18 = vector.extract_strided_slice %11 {offsets = [6, 0], sizes = [1, 32], strides = [1, 1]} : vector<8x128xf32> to vector<1x32xf32>
    %19 = vector.extract_strided_slice %11 {offsets = [7, 0], sizes = [1, 32], strides = [1, 1]} : vector<8x128xf32> to vector<1x32xf32>
    %cst = arith.constant dense<0.000000e+00> : vector<16x128xf32>
    %20 = tpu.matmul %0, %1, %cst {dimension_numbers = #tpu.dot_dimension_numbers<[1], [0], [0], [1], [0, 0, 1, 1], [], []>} : vector<16x32xf32>, vector<32x128xf32>, vector<16x128xf32> -> vector<16x128xf32>
    %21 = vector.broadcast %12 : vector<1x128xf32> to vector<16x128xf32>
    %22 = arith.addf %20, %21 : vector<16x128xf32>
    %23 = vector.extract_strided_slice %22 {offsets = [0, 0], sizes = [2, 32], strides = [1, 1]} : vector<16x128xf32> to vector<2x32xf32>
    %24 = vector.extract_strided_slice %22 {offsets = [0, 32], sizes = [16, 32], strides = [1, 1]} : vector<16x128xf32> to vector<16x32xf32>
    %25 = vector.extract_strided_slice %22 {offsets = [0, 64], sizes = [16, 32], strides = [1, 1]} : vector<16x128xf32> to vector<16x32xf32>
    %cst_11 = arith.constant dense<0.000000e+00> : vector<16x32xf32>
    %26 = tpu.matmul %8, %23, %cst_11 {dimension_numbers = #tpu.dot_dimension_numbers<[1], [0], [0], [1], [0, 0, 1, 1], [], []>} : vector<16x2xf32>, vector<2x32xf32>, vector<16x32xf32> -> vector<16x32xf32>
    %27 = arith.mulf %24, %26 : vector<16x32xf32>
    %cst_12 = arith.constant dense<0.000000e+00> : vector<16x128xf32>
    %28 = tpu.matmul %27, %5, %cst_12 {dimension_numbers = #tpu.dot_dimension_numbers<[1], [0], [0], [1], [0, 0, 1, 1], [], []>} : vector<16x32xf32>, vector<32x128xf32>, vector<16x128xf32> -> vector<16x128xf32>
    %29 = vector.extract_strided_slice %28 {offsets = [0, 0], sizes = [16, 8], strides = [1, 1]} : vector<16x128xf32> to vector<16x8xf32>
    %30 = vector.shape_cast %29 : vector<16x8xf32> to vector<1x16x8xf32>
    %cst_13 = arith.constant dense<0xFF800000> : vector<1xf32>
    %31 = vector.multi_reduction <maximumf>, %30, %cst_13 [1, 2] : vector<1x16x8xf32> to vector<1xf32>
    %32 = vector.shape_cast %31 : vector<1xf32> to vector<1x1x1xf32>
    %33 = vector.extract %32[0, 0, 0] : f32 from vector<1x1x1xf32>
    %34 = vector.broadcast %33 : f32 to vector<16x8xf32>
    %35 = arith.subf %29, %34 : vector<16x8xf32>
    %36 = math.exp %35 : vector<16x8xf32>
    %cst_14 = arith.constant dense<0.000000e+00> : vector<16x128xf32>
    %37 = tpu.matmul %36, %6, %cst_14 {dimension_numbers = #tpu.dot_dimension_numbers<[1], [0], [0], [1], [0, 0, 1, 1], [], []>} : vector<16x8xf32>, vector<8x128xf32>, vector<16x128xf32> -> vector<16x128xf32>
    %38 = vector.extract_strided_slice %37 {offsets = [0, 0], sizes = [16, 32], strides = [1, 1]} : vector<16x128xf32> to vector<16x32xf32>
    %39 = arith.mulf %38, %25 : vector<16x32xf32>
    %cst_15 = arith.constant dense<0.000000e+00> : vector<2x32xf32>
    %40 = tpu.matmul %10, %39, %cst_15 {dimension_numbers = #tpu.dot_dimension_numbers<[1], [0], [0], [1], [0, 0, 1, 1], [], []>} : vector<2x16xf32>, vector<16x32xf32>, vector<2x32xf32> -> vector<2x32xf32>
    %cst_16 = arith.constant dense<0.000000e+00> : vector<2x32xf32>
    %41 = tpu.matmul %10, %38, %cst_16 {dimension_numbers = #tpu.dot_dimension_numbers<[1], [0], [0], [1], [0, 0, 1, 1], [], []>} : vector<2x16xf32>, vector<16x32xf32>, vector<2x32xf32> -> vector<2x32xf32>
    %42 = tpu.reciprocal %41 {approx = true} : vector<2x32xf32> -> vector<2x32xf32>
    %43 = arith.mulf %40, %42 : vector<2x32xf32>
    %cst_17 = arith.constant dense<0.000000e+00> : vector<2x128xf32>
    %44 = tpu.matmul %43, %2, %cst_17 {dimension_numbers = #tpu.dot_dimension_numbers<[1], [0], [0], [1], [0, 0, 1, 1], [], []>} : vector<2x32xf32>, vector<32x128xf32>, vector<2x128xf32> -> vector<2x128xf32>
    %45 = vector.extract_strided_slice %44 {offsets = [0, 0], sizes = [2, 32], strides = [1, 1]} : vector<2x128xf32> to vector<2x32xf32>
    %46 = vector.broadcast %13 : vector<1x32xf32> to vector<2x32xf32>
    %47 = arith.addf %45, %46 : vector<2x32xf32>
    %cst_18 = arith.constant dense<0.000000e+00> : vector<16x32xf32>
    %48 = tpu.matmul %8, %47, %cst_18 {dimension_numbers = #tpu.dot_dimension_numbers<[1], [0], [0], [1], [0, 0, 1, 1], [], []>} : vector<16x2xf32>, vector<2x32xf32>, vector<16x32xf32> -> vector<16x32xf32>
    %49 = arith.addf %0, %48 : vector<16x32xf32>
    %cst_19 = arith.constant dense<0.000000e+00> : vector<16xf32>
    %50 = vector.multi_reduction <add>, %49, %cst_19 [1] : vector<16x32xf32> to vector<16xf32>
    %51 = vector.shape_cast %50 : vector<16xf32> to vector<16x1xf32>
    %cst_20 = arith.constant 3.200000e+01 : f32
    %52 = vector.broadcast %cst_20 : f32 to vector<16x1xf32>
    %53 = arith.divf %51, %52 : vector<16x1xf32>
    %54 = vector.broadcast %53 : vector<16x1xf32> to vector<16x32xf32>
    %55 = arith.subf %49, %54 : vector<16x32xf32>
    %56 = arith.mulf %55, %55 : vector<16x32xf32>
    %cst_21 = arith.constant dense<0.000000e+00> : vector<16xf32>
    %57 = vector.multi_reduction <add>, %56, %cst_21 [1] : vector<16x32xf32> to vector<16xf32>
    %58 = vector.shape_cast %57 : vector<16xf32> to vector<16x1xf32>
    %cst_22 = arith.constant 3.200000e+01 : f32
    %59 = vector.broadcast %cst_22 : f32 to vector<16x1xf32>
    %60 = arith.divf %58, %59 : vector<16x1xf32>
    %cst_23 = arith.constant 9.99999974E-6 : f32
    %61 = vector.broadcast %cst_23 : f32 to vector<16x1xf32>
    %62 = arith.addf %60, %61 : vector<16x1xf32>
    %63 = math.rsqrt %62 : vector<16x1xf32>
    %64 = vector.broadcast %63 : vector<16x1xf32> to vector<16x32xf32>
    %65 = arith.mulf %55, %64 : vector<16x32xf32>
    %66 = vector.broadcast %14 : vector<1x32xf32> to vector<16x32xf32>
    %67 = arith.mulf %65, %66 : vector<16x32xf32>
    %68 = vector.broadcast %15 : vector<1x32xf32> to vector<16x32xf32>
    %69 = arith.addf %67, %68 : vector<16x32xf32>
    %cst_24 = arith.constant dense<0.000000e+00> : vector<16x128xf32>
    %70 = tpu.matmul %69, %3, %cst_24 {dimension_numbers = #tpu.dot_dimension_numbers<[1], [0], [0], [1], [0, 0, 1, 1], [], []>} : vector<16x32xf32>, vector<32x128xf32>, vector<16x128xf32> -> vector<16x128xf32>
    %71 = vector.broadcast %16 : vector<1x128xf32> to vector<16x128xf32>
    %72 = arith.addf %70, %71 : vector<16x128xf32>
    %cst_25 = arith.constant 0.000000e+00 : f32
    %73 = vector.broadcast %cst_25 : f32 to vector<16x128xf32>
    %74 = arith.maximumf %72, %73 : vector<16x128xf32>
    %75 = vector.extract_strided_slice %74 {offsets = [0, 0], sizes = [16, 64], strides = [1, 1]} : vector<16x128xf32> to vector<16x64xf32>
    %cst_26 = arith.constant dense<0.000000e+00> : vector<16x128xf32>
    %76 = tpu.matmul %75, %4, %cst_26 {dimension_numbers = #tpu.dot_dimension_numbers<[1], [0], [0], [1], [0, 0, 1, 1], [], []>} : vector<16x64xf32>, vector<64x128xf32>, vector<16x128xf32> -> vector<16x128xf32>
    %77 = vector.extract_strided_slice %76 {offsets = [0, 0], sizes = [16, 32], strides = [1, 1]} : vector<16x128xf32> to vector<16x32xf32>
    %78 = vector.broadcast %17 : vector<1x32xf32> to vector<16x32xf32>
    %79 = arith.addf %77, %78 : vector<16x32xf32>
    %80 = arith.addf %69, %79 : vector<16x32xf32>
    %cst_27 = arith.constant dense<0.000000e+00> : vector<16xf32>
    %81 = vector.multi_reduction <add>, %80, %cst_27 [1] : vector<16x32xf32> to vector<16xf32>
    %82 = vector.shape_cast %81 : vector<16xf32> to vector<16x1xf32>
    %cst_28 = arith.constant 3.200000e+01 : f32
    %83 = vector.broadcast %cst_28 : f32 to vector<16x1xf32>
    %84 = arith.divf %82, %83 : vector<16x1xf32>
    %85 = vector.broadcast %84 : vector<16x1xf32> to vector<16x32xf32>
    %86 = arith.subf %80, %85 : vector<16x32xf32>
    %87 = arith.mulf %86, %86 : vector<16x32xf32>
    %cst_29 = arith.constant dense<0.000000e+00> : vector<16xf32>
    %88 = vector.multi_reduction <add>, %87, %cst_29 [1] : vector<16x32xf32> to vector<16xf32>
    %89 = vector.shape_cast %88 : vector<16xf32> to vector<16x1xf32>
    %cst_30 = arith.constant 3.200000e+01 : f32
    %90 = vector.broadcast %cst_30 : f32 to vector<16x1xf32>
    %91 = arith.divf %89, %90 : vector<16x1xf32>
    %cst_31 = arith.constant 9.99999974E-6 : f32
    %92 = vector.broadcast %cst_31 : f32 to vector<16x1xf32>
    %93 = arith.addf %91, %92 : vector<16x1xf32>
    %94 = math.rsqrt %93 : vector<16x1xf32>
    %95 = vector.broadcast %94 : vector<16x1xf32> to vector<16x32xf32>
    %96 = arith.mulf %86, %95 : vector<16x32xf32>
    %97 = vector.broadcast %18 : vector<1x32xf32> to vector<16x32xf32>
    %98 = arith.mulf %96, %97 : vector<16x32xf32>
    %99 = vector.broadcast %19 : vector<1x32xf32> to vector<16x32xf32>
    %100 = arith.addf %98, %99 : vector<16x32xf32>
    %c0_32 = arith.constant 0 : index
    %c0_33 = arith.constant 0 : index
    %101 = vector.load %arg2[%c0_32, %c0_33] : memref<16x32xf32, #tpu.memory_space<vmem>>, vector<16x32xf32>
    tpu.vector_store %arg2[%c0_32, %c0_33], %100 {strides = array<i32>} : memref<16x32xf32, #tpu.memory_space<vmem>>, vector<16x32xf32>,
    return
  }
}

</mosaic_0001>

<bundles_post_ra>
// kernel: decoder_layer_forward.1
= control target key start
LH: loop header
LB: loop body
LE: loop exit
PB: predicated region body
PF: predicated region fallthrough
CT: control target
= control target key end

     0   :  { %7 = vsyncpa [#allocation3], 0  ;;  %s1388_s0 = inlined_call_operand.hbm [shape: f32[16,32], index: 0, kind: input, shape index: {}]   ;;  %s1389_s1 = inlined_call_operand.hbm [shape: f32[232,128], index: 1, kind: input, shape index: {}]   ;;  %s1390_s2 = inlined_call_operand.hbm [shape: f32[16,32], index: 2, kind: output, shape index: {}]  }
   0x1   :  { %8 = vsyncpa [#allocation6], 0 }
   0x2   :  { %9 = vsyncpa [#allocation4], 0  ;;  %s1277_s9 = smov [#allocation2]  }
   0x3   :  { %s15_s10 = sshll.u32 %s1277_s9, 4  ;;  %s16_s10 = int_to_ptr.vmem [resolvable:$true] %s15_s10 }
   0x4   :  { %s1219_s11 = scalar_lea.vmem %s16_s10, 256  ;;  %p1224_p1 = scmp.lt.s32.totalorder %s16_s10, %s16_s10 }
   0x5   :  { %p1220_p0 = scmp.ne.s32.totalorder %s16_s10, %s1219_s11  ;;  %p1225_p2 = scmp.lt.s32.totalorder %s1219_s11, %s1219_s11 }
   0x7   :  { %p1226_p3 = por %p1225_p2, %p1224_p1 }
   0x9   :  { %p1227_p4 = pnand %p1226_p3, %p1220_p0 }
   0xb   :  { %1230 = shalt.err (!%p1227_p4)
}
   0xc   :  { %s1278_s12 = smov 128   ;;  %s1279_s13 = smov 8  }
   0xd   :  { %21 = dma.hbm_to_vmem [thread:$0]  %s1388_s0, 256, %s16_s10, [#allocation3], %s1278_s12, %s1278_s12, %s1279_s13  }
   0xe   :  { %s1280_s16 = smov [#allocation5]  }
   0xf   :  { %s27_s17 = sshll.u32 %s1280_s16, 4  ;;  %s28_s17 = int_to_ptr.vmem [resolvable:$true] %s27_s17 }
  0x10   :  { %s1239_s18 = scalar_lea.vmem %s28_s17, 3712  ;;  %p1244_p6 = scmp.lt.s32.totalorder %s28_s17, %s28_s17 }
  0x11   :  { %p1240_p5 = scmp.ne.s32.totalorder %s28_s17, %s1239_s18  ;;  %p1245_p7 = scmp.lt.s32.totalorder %s1239_s18, %s1239_s18 }
  0x13   :  { %p1246_p8 = por %p1245_p7, %p1244_p6 }
  0x15   :  { %p1247_p9 = pnand %p1246_p8, %p1240_p5 }
  0x17   :  { %1250 = shalt.err (!%p1247_p9)
}
  0x18   :  { %33 = dma.hbm_to_vmem [thread:$0]  %s1389_s1, 3712, %s28_s17, [#allocation6], %s1278_s12, %s1278_s12, %s1279_s13  }
  0x19   :  { %1271 = dma.done.wait [#allocation3], 256  }
  0x1a   :  { %1272 = vsyncadd [#allocation3], 4294967040 }
  0x1b   :  { %1273 = dma.done.wait [#allocation6], 3712  }
  0x1c   :  { %1274 = vsyncadd [#allocation6], 4294963584  ;;  %vm75_vm0 = vcmask 261120   ;;  %v45_v0 = vld [vmem:[#allocation5 + $0x18] sm:$0xff]  ;;  %v44_v1 = vld [vmem:[#allocation5 + $0x10] sm:$0xff]  ;;  %vm157_vm1 = vcmask 15360   ;;  %v71_v7 = vlaneseq }
  0x1d   :  { %1093 = vmatprep.subr.mxu0 %v45_v0  ;;  %v1314_v2 = vld [vmem:[#allocation2] sm:$0xff]  ;;  %v43_v3 = vld [vmem:[#allocation5 + $0x8] sm:$0xff]  ;;  %v42_v4 = vld [vmem:[#allocation5] sm:$0xff]  ;;  %vm164_vm2 = vcmask 1041408   ;;  %s1281_s0 = smov 32   ;;  %s1282_s1 = smov 96  }
  0x1e   :  { %1094 = vmatpush3.msra.mxu0 %v45_v0  ;;  %1101 = vmatprep.mubr.msk.f32.mxu0 %vm75_vm0, %v1314_v2  ;;  %v1318_v5 = vld [vmem:[#allocation2 + $0x8] sm:$0xff]  ;;  %v1322_v6 = vld [vmem:[#allocation5 + $0xc8] sm:$0xff]  ;;  %v1326_v8 = vshrl.u32 %v71_v7, 7  ;;  %v1329_v10 = vld [vmem:[#allocation5 + $0xe0] sm:$0xff]  ;;  %s1283_s21 = smov 64   ;;  %vm338_vm3 = vcmask 64512  }
  0x1f   :  { %1095 = vmatprep.subr.mxu0 %v44_v1  ;;  %1106 = vmatprep.mubr.msk.f32.mxu1 %vm157_vm1, %v1322_v6  ;;  %v1332_v16 = vld [vmem:[#allocation5 + $0xd0] sm:$0xff]  ;;  %v65_v19 = vld [vmem:[#allocation5 + $0xb8] sm:$0xff]  ;;  %v63_v21 = vld [vmem:[#allocation5 + $0xa8] sm:$0xff]  ;;  %v1284_v49 = vmov 0.0   ;;  %vm1285_vm4 = vmmov 0   ;;  %vm448_vm5 = vcmask 130048  }
  0x20   :  { %1096 = vmatpush3.msra.mxu0 %v44_v1  ;;  %v73_v9 = vsub.s32 0, %v1326_v8  ;;  %v64_v20 = vld [vmem:[#allocation5 + $0xb0] sm:$0xff]  ;;  %v62_v22 = vld [vmem:[#allocation5 + $0xa0] sm:$0xff]  ;;  %v69_v56 = vld [vmem:[#allocation5 + $0xd8] sm:$0xff]  ;;  %vm878_vm6 = vcmask 523264   ;;  %s1286_s23 = smov [#allocation7]  }
  0x21   :  { %1097 = vmatprep.subr.mxu0 %v43_v3  ;;  %v66_v34 = vld [vmem:[#allocation5 + $0xc0] sm:$0xff]  ;;  %v49_v57 = vld [vmem:[#allocation5 + $0x38] sm:$0xff]  ;;  %v48_v58 = vld [vmem:[#allocation5 + $0x30] sm:$0xff]  ;;  %s1013_s24 = sshll.u32 %s1286_s23, 4  ;;  %s1014_s24 = int_to_ptr.vmem [resolvable:$true] %s1013_s24 }
  0x22   :  { %1098 = vmatpush3.msra.mxu0 %v43_v3  ;;  %v74_v11 = vrot.slane %v1329_v10, %v73_v9  ;;  %v47_v59 = vld [vmem:[#allocation5 + $0x28] sm:$0xff]  ;;  %v46_v60 = vld [vmem:[#allocation5 + $0x20] sm:$0xff]  ;;  %s1251_s25 = scalar_lea.vmem %s1014_s24, 256  ;;  %p1256_p11 = scmp.lt.s32.totalorder %s1014_s24, %s1014_s24 }
  0x23   :  { %1099 = vmatprep.subr.mxu0 %v42_v4  ;;  %p1252_p10 = scmp.ne.s32.totalorder %s1014_s24, %s1251_s25  ;;  %p1257_p12 = scmp.lt.s32.totalorder %s1251_s25, %s1251_s25 }
  0x24   :  { %1100 = vmatpush3.msra.mxu0 %v42_v4  ;;  %v669_v4 = vsub.s32 1, %v1326_v8 }
  0x25   :  { %1102 = vmatmul.mubr.msk.f32.vlgmr.msra.gmra.mxu0 %vm75_vm0, %v1318_v5  ;;  %1120 = vmatprep.subr.mxu0 %v66_v34  ;;  %p1258_p13 = por %p1257_p12, %p1256_p11 }
  0x26   :  { %1121 = vmatpush3.msra.mxu0 %v66_v34 }
  0x27   :  { %1125 = vmatprep.subr.mxu0 %v1284_v49  ;;  %p1259_p0 = pnand %p1258_p13, %p1252_p10 }
  0xe5   :  { %v1103_v12 = vpop.f32.mrf.mxu0 }
  0xe6   :  { %v154_v13 = vadd.f32 %v1103_v12, %v74_v11 }
  0xe7   :  { %v148_v14 = vpop.f32.mrf.mxu0 }
  0xe8   :  { %v149_v15 = vadd.f32 %v148_v14, %v74_v11 }
  0xea   :  { %1104 = vmatprep.subr.msk.mxu1 %vm164_vm2, %v149_v15 }
  0xeb   :  { %1105 = vmatpush3.msk.msra.mxu1 %vm164_vm2, %v149_v15 }
  0xec   :  { %1107 = vmatmul.mubr.msk.f32.vlgmr.msra.gmra.mxu1 %vm157_vm1, %v1332_v16  ;;  %1109 = vmatprep.subr.mxu1 %v65_v19 }
  0xed   :  { %1110 = vmatpush3.msra.mxu1 %v65_v19 }
  0xee   :  { %1111 = vmatprep.subr.mxu1 %v64_v20 }
  0xef   :  { %1112 = vmatpush3.msra.mxu1 %v64_v20 }
  0xf0   :  { %1113 = vmatprep.subr.mxu1 %v63_v21 }
  0xf1   :  { %1114 = vmatpush3.msra.mxu1 %v63_v21 }
  0xf2   :  { %1115 = vmatprep.subr.mxu1 %v62_v22 }
  0xf3   :  { %1116 = vmatpush3.msra.mxu1 %v62_v22 }
  0xf4   :  { %1139 = vmatprep.subr.mxu1 %v1284_v49 }
 0x1ac   :  { %v1108_v17 = vpop.f32.mrf.mxu1 }
 0x1ae   :  { %v234_v18 = vpop.f32.mrf.mxu1 }
 0x1af   :  { %245 = vrot.lane.b32.xlu0 %v234_v18, %s1281_s0 }
 0x1b3   :  { %247 = vrot.lane.b32.xlu0 %v1108_v17, %s1281_s0 }
 0x221   :  { %v246_v23 = vpop.permute.xlu0 %245 }
 0x222   :  { %v251_v24 = vmul.f32 %v246_v23, %v149_v15 }
 0x224   :  { %255 = vrot.lane.b32.xlu1 %v251_v24, %s1282_s1 }
 0x225   :  { %v248_v25 = vpop.permute.xlu0 %247 }
 0x226   :  { %v252_v26 = vmul.f32 %v248_v25, %v154_v13 }
 0x228   :  { %257 = vrot.lane.b32.xlu1 %v252_v26, %s1282_s1 }
 0x22c   :  { %442 = vrot.lane.b32.xlu1 %v154_v13, %s1283_s21 }
 0x230   :  { %440 = vrot.lane.b32.xlu1 %v149_v15, %s1283_s21 }
 0x296   :  { %v256_v27 = vpop.permute.xlu1 %255 }
 0x297   :  { %1117 = vmatprep.mubr.msk.f32.mxu1 %vm75_vm0, %v256_v27  ;;  %v52_v27 = vld [vmem:[#allocation5 + $0x50] sm:$0xff] }
 0x29a   :  { %v258_v28 = vpop.permute.xlu1 %257 }
 0x29b   :  { %1118 = vmatmul.mubr.msk.f32.vlgmr.msra.gmra.mxu1 %vm75_vm0, %v258_v28  ;;  %v51_v28 = vld [vmem:[#allocation5 + $0x48] sm:$0xff] }
 0x29c   :  { %1147 = vmatprep.mubr.msk.f32.mxu1 %vm1285_vm4, %v1284_v49  ;;  %1140 = vmatpush3.msra.mxu1 %v49_v57 }
 0x29d   :  { %1141 = vmatprep.subr.mxu1 %v1284_v49 }
 0x29e   :  { %v443_v50 = vpop.permute.xlu1 %442  ;;  %1142 = vmatpush3.msra.mxu1 %v48_v58 }
 0x29f   :  { %1143 = vmatprep.subr.mxu1 %v1284_v49 }
 0x2a0   :  { %1144 = vmatpush3.msra.mxu1 %v47_v59 }
 0x2a1   :  { %1145 = vmatprep.subr.mxu1 %v1284_v49 }
 0x2a2   :  { %v441_v53 = vpop.permute.xlu1 %440  ;;  %1146 = vmatpush3.msra.mxu1 %v46_v60 }
 0x35b   :  { %v1119_v29 = vpop.f32.mrf.mxu1 }
 0x35c   :  { %v340_v31 = vsel %vm338_vm3, %v1119_v29, -inf }
 0x35d   :  { %v329_v30 = vpop.f32.mrf.mxu1 }
 0x35e   :  { %v339_v32 = vsel %vm338_vm3, %v329_v30, -inf }
 0x35f   :  { %v341_v33 = vmax.f32 %v339_v32, %v340_v31  ;;  %v60_v31 = vld [vmem:[#allocation5 + $0x90] sm:$0xff]  ;;  %v59_v32 = vld [vmem:[#allocation5 + $0x88] sm:$0xff] }
 0x361   :  { %342 = vmax.xlane.f32.xlu0 %v341_v33  ;;  %v58_v33 = vld [vmem:[#allocation5 + $0x80] sm:$0xff] }
 0x3ea   :  { %v343_v35 = vpop.xlane.xlu0 %342 }
 0x3eb   :  { %v344_v36 = vrot.slane %v343_v35, 4 }
 0x3ed   :  { %v345_v37 = vmax.f32 %v343_v35, %v344_v36 }
 0x3ef   :  { %v346_v38 = vrot.slane %v345_v37, 2 }
 0x3f1   :  { %v347_v39 = vmax.f32 %v345_v37, %v346_v38 }
 0x3f3   :  { %v348_v40 = vrot.slane %v347_v39, 1 }
 0x3f5   :  { %v349_v41 = vmax.f32 %v347_v39, %v348_v40  ;;  %v781_v40 = vsub.s32 2, %v1326_v8 }
 0x3f7   :  { %1185 = vpush %v349_v41  ;;  %v787_v41 = vsub.s32 3, %v1326_v8 }
 0x428   :  { %s1186_s22 = spop %1185 }
 0x429   :  { %v351_v42 = vstv %s1186_s22 }
 0x42a   :  { %v352_v43 = vsub.f32 %v329_v30, %v351_v42  ;;  %v353_v44 = vsub.f32 %v1119_v29, %v351_v42  ;;  %v50_v29 = vld [vmem:[#allocation5 + $0x40] sm:$0xff]  ;;  %v61_v30 = vld [vmem:[#allocation5 + $0x98] sm:$0xff]  ;;  %v782_v42 = vrot.slane %v1329_v10, %v781_v40 }
 0x42b   :  { %1166 = vmatprep.subr.mxu1 %v61_v30 }
 0x42c   :  { %v354_v45 = vmul.f32 1.442695, %v352_v43  ;;  %v356_v46 = vmul.f32 1.442695, %v353_v44 }
 0x42e   :  { %1197 = vpow2.f32 %v354_v45  ;;  %v788_v45 = vrot.slane %v1329_v10, %v787_v41 }
 0x42f   :  { %1199 = vpow2.f32 %v356_v46 }
 0x43b   :  { %v1198_v47 = vpop.eup %1197 }
 0x43c   :  { %v1200_v48 = vpop.eup %1199  ;;  %1122 = vmatprep.mubr.msk.f32.mxu0 %vm338_vm3, %v1198_v47 }
 0x43d   :  { %1123 = vmatmul.mubr.msk.f32.vlgmr.msra.gmra.mxu0 %vm338_vm3, %v1200_v48 }
 0x43e   :  { %1129 = vmatprep.mubr.msk.f32.mxu0 %vm1285_vm4, %v1284_v49 }
 0x4fd   :  { %v1124_v51 = vpop.f32.mrf.mxu0 }
 0x4fe   :  { %v447_v52 = vmul.f32 %v1124_v51, %v443_v50 }
 0x4ff   :  { %v430_v54 = vpop.f32.mrf.mxu0 }
 0x500   :  { %v446_v55 = vmul.f32 %v441_v53, %v430_v54  ;;  %1126 = vmatpush3.msra.mxu0 %v447_v52  ;;  %v57_v52 = vld [vmem:[#allocation5 + $0x78] sm:$0xff]  ;;  %v56_v53 = vld [vmem:[#allocation5 + $0x70] sm:$0xff] }
 0x501   :  { %1127 = vmatprep.subr.mxu0 %v1284_v49 }
 0x502   :  { %1128 = vmatpush3.msra.mxu0 %v446_v55  ;;  %v54_v55 = vld [vmem:[#allocation5 + $0x60] sm:$0xff] }
 0x503   :  { %1130 = vmatmul.mubr.msk.f32.vlgmr.msra.gmra.mxu0 %vm448_vm5, %v69_v56  ;;  %1132 = vmatprep.subr.mxu0 %v1284_v49 }
 0x504   :  { %1133 = vmatpush3.msra.mxu0 %v1124_v51  ;;  %1136 = vmatprep.mubr.msk.f32.mxu0 %vm1285_vm4, %v1284_v49 }
 0x505   :  { %1134 = vmatprep.subr.mxu0 %v1284_v49 }
 0x506   :  { %1135 = vmatpush3.msra.mxu0 %v430_v54  ;;  %v55_v54 = vld [vmem:[#allocation5 + $0x68] sm:$0xff] }
 0x507   :  { %1137 = vmatmul.mubr.msk.f32.vlgmr.msra.gmra.mxu0 %vm448_vm5, %v69_v56  ;;  %v793_v56 = vsub.s32 4, %v1326_v8 }
 0x508   :  { %1152 = vmatprep.mubr.msk.f32.mxu0 %vm157_vm1, %v1322_v6  ;;  %v670_v6 = vrot.slane %v1329_v10, %v669_v4 }
 0x509   :  { %v794_v57 = vrot.slane %v1329_v10, %v793_v56 }
 0x5c3   :  { %v518_v61 = vpop.f32.mrf.mxu0 }
 0x5c5   :  { %v1131_v62 = vpop.f32.mrf.mxu0 }
 0x5c7   :  { %v588_v63 = vpop.f32.mrf.mxu0 }
 0x5c8   :  { %1201 = vrcp.f32 %v588_v63 }
 0x5c9   :  { %v1138_v0 = vpop.f32.mrf.mxu0 }
 0x5ca   :  { %v962_v0 = vsub.s32 5, %v1326_v8 }
 0x5d5   :  { %v1202_v1 = vpop.eup %1201 }
 0x5d6   :  { %v593_v3 = vmul.f32 %v1202_v1, %v518_v61  ;;  %v963_v1 = vrot.slane %v1329_v10, %v962_v0 }
 0x5d8   :  { %1148 = vmatmul.mubr.msk.f32.vlgmr.msra.gmra.mxu1 %vm75_vm0, %v593_v3 }
 0x5d9   :  { %1167 = vmatpush3.msra.mxu1 %v61_v30 }
 0x5da   :  { %1168 = vmatprep.subr.mxu1 %v60_v31 }
 0x5db   :  { %1169 = vmatpush3.msra.mxu1 %v60_v31 }
 0x5dc   :  { %1170 = vmatprep.subr.mxu1 %v59_v32 }
 0x5dd   :  { %1171 = vmatpush3.msra.mxu1 %v59_v32 }
 0x5de   :  { %1172 = vmatprep.subr.mxu1 %v58_v33 }
 0x5df   :  { %1173 = vmatpush3.msra.mxu1 %v58_v33 }
 0x5e0   :  { %1174 = vmatprep.subr.mxu1 %v57_v52 }
 0x5e1   :  { %1175 = vmatpush3.msra.mxu1 %v57_v52 }
 0x5e2   :  { %1176 = vmatprep.subr.mxu1 %v56_v53 }
 0x5e3   :  { %1177 = vmatpush3.msra.mxu1 %v56_v53 }
 0x5e4   :  { %1178 = vmatprep.subr.mxu1 %v55_v54 }
 0x5e5   :  { %1179 = vmatpush3.msra.mxu1 %v55_v54 }
 0x5e6   :  { %1180 = vmatprep.subr.mxu1 %v54_v55 }
 0x5e7   :  { %1181 = vmatpush3.msra.mxu1 %v54_v55 }
 0x698   :  { %v663_v7 = vpop.f32.mrf.mxu1 }
 0x699   :  { %v671_v9 = vadd.f32 %v670_v6, %v663_v7 }
 0x69a   :  { %v1149_v11 = vpop.f32.mrf.mxu1 }
 0x69b   :  { %1150 = vmatprep.subr.msk.mxu0 %vm164_vm2, %v671_v9 }
 0x69c   :  { %1151 = vmatpush3.msk.msra.mxu0 %vm164_vm2, %v671_v9 }
 0x69d   :  { %1153 = vmatmul.mubr.msk.f32.vlgmr.msra.gmra.mxu0 %vm157_vm1, %v1332_v16 }
 0x75d   :  { %v1154_v12 = vpop.f32.mrf.mxu0 }
 0x75e   :  { %v751_v13 = vadd.f32 %v1154_v12, %v1318_v5 }
 0x75f   :  { %v741_v14 = vpop.f32.mrf.mxu0 }
 0x760   :  { %v750_v15 = vadd.f32 %v741_v14, %v1314_v2  ;;  %v755_v17 = vsel %vm75_vm0, %v751_v13, 0.0  ;;  %v53_v2 = vld [vmem:[#allocation5 + $0x58] sm:$0xff] }
 0x761   :  { %756 = vadd.xlane.f32.xlu0 %v755_v17  ;;  %1155 = vmatprep.subr.mxu0 %v53_v2 }
 0x762   :  { %v752_v18 = vsel %vm75_vm0, %v750_v15, 0.0  ;;  %1156 = vmatpush3.msra.mxu0 %v53_v2 }
 0x763   :  { %753 = vadd.xlane.f32.xlu1 %v752_v18  ;;  %1157 = vmatprep.subr.mxu0 %v52_v27 }
 0x764   :  { %1158 = vmatpush3.msra.mxu0 %v52_v27 }
 0x765   :  { %1159 = vmatprep.subr.mxu0 %v51_v28 }
 0x766   :  { %1160 = vmatpush3.msra.mxu0 %v51_v28  ;;  %v996_v28 = vsub.s32 6, %v1326_v8 }
 0x767   :  { %1161 = vmatprep.subr.mxu0 %v50_v29 }
 0x768   :  { %1162 = vmatpush3.msra.mxu0 %v50_v29  ;;  %v1002_v29 = vsub.s32 7, %v1326_v8  ;;  %v997_v30 = vrot.slane %v1329_v10, %v996_v28 }
 0x76a   :  { %v1003_v33 = vrot.slane %v1329_v10, %v1002_v29 }
 0x7ea   :  { %v757_v19 = vpop.xlane.xlu0 %756 }
 0x7eb   :  { %v760_v20 = vmul.f32 0.03125, %v757_v19 }
 0x7ec   :  { %v754_v21 = vpop.xlane.xlu1 %753 }
 0x7ed   :  { %v759_v22 = vmul.f32 0.03125, %v754_v21  ;;  %v762_v23 = vsub.f32 %v751_v13, %v760_v20 }
 0x7ef   :  { %v761_v24 = vsub.f32 %v750_v15, %v759_v22  ;;  %v764_v26 = vmul.f32 %v762_v23, %v762_v23 }
 0x7f1   :  { %v763_v25 = vmul.f32 %v761_v24, %v761_v24  ;;  %v768_v5 = vsel %vm75_vm0, %v764_v26, 0.0 }
 0x7f3   :  { %v765_v16 = vsel %vm75_vm0, %v763_v25, 0.0 }
 0x7f4   :  { %766 = vadd.xlane.f32.xlu0 %v765_v16 }
 0x7f8   :  { %769 = vadd.xlane.f32.xlu0 %v768_v5 }
 0x87d   :  { %v767_v34 = vpop.xlane.xlu0 %766 }
 0x87e   :  { %v771_v35 = vmul.f32 0.03125, %v767_v34 }
 0x880   :  { %v773_v36 = vadd.f32 1e-05, %v771_v35 }
 0x881   :  { %v770_v37 = vpop.xlane.xlu0 %769 }
 0x882   :  { %1203 = vrsqrt.f32 %v773_v36  ;;  %v772_v38 = vmul.f32 0.03125, %v770_v37 }
 0x884   :  { %v774_v39 = vadd.f32 1e-05, %v772_v38 }
 0x886   :  { %1205 = vrsqrt.f32 %v774_v39 }
 0x88f   :  { %v1204_v43 = vpop.eup %1203 }
 0x890   :  { %v777_v44 = vmul.f32 %v1204_v43, %v761_v24 }
 0x892   :  { %v783_v46 = vmul.f32 %v782_v42, %v777_v44 }
 0x893   :  { %v1206_v47 = vpop.eup %1205 }
 0x894   :  { %v778_v48 = vmul.f32 %v1206_v47, %v762_v23  ;;  %v789_v49 = vadd.f32 %v788_v45, %v783_v46 }
 0x896   :  { %v784_v50 = vmul.f32 %v782_v42, %v778_v48  ;;  %1163 = vmatprep.mubr.msk.f32.mxu0 %vm75_vm0, %v789_v49 }
 0x898   :  { %v790_v51 = vadd.f32 %v788_v45, %v784_v50 }
 0x89a   :  { %1164 = vmatmul.mubr.msk.f32.vlgmr.msra.gmra.mxu0 %vm75_vm0, %v790_v51 }
 0x95a   :  { %v1165_v58 = vpop.f32.mrf.mxu0 }
 0x95b   :  { %v873_v59 = vadd.f32 %v1165_v58, %v794_v57 }
 0x95c   :  { %v867_v60 = vpop.f32.mrf.mxu0 }
 0x95d   :  { %v868_v61 = vadd.f32 %v867_v60, %v794_v57  ;;  %v877_v63 = vmax.f32 %v873_v59, 0.0 }
 0x95f   :  { %v876_v62 = vmax.f32 %v868_v61, 0.0 }
 0x961   :  { %1182 = vmatprep.mubr.msk.f32.mxu1 %vm878_vm6, %v876_v62 }
 0x962   :  { %1183 = vmatmul.mubr.msk.f32.vlgmr.msra.gmra.mxu1 %vm878_vm6, %v877_v63 }
 0xa22   :  { %v1184_v3 = vpop.f32.mrf.mxu1 }
 0xa23   :  { %v965_v4 = vadd.f32 %v1184_v3, %v963_v1 }
 0xa24   :  { %v951_v6 = vpop.f32.mrf.mxu1 }
 0xa25   :  { %v964_v7 = vadd.f32 %v963_v1, %v951_v6  ;;  %v967_v9 = vadd.f32 %v965_v4, %v790_v51 }
 0xa27   :  { %v971_v11 = vsel %vm75_vm0, %v967_v9, 0.0  ;;  %v966_v12 = vadd.f32 %v964_v7, %v789_v49 }
 0xa28   :  { %972 = vadd.xlane.f32.xlu1 %v971_v11 }
 0xa29   :  { %v968_v13 = vsel %vm75_vm0, %v966_v12, 0.0 }
 0xa2a   :  { %969 = vadd.xlane.f32.xlu0 %v968_v13 }
 0xab1   :  { %v973_v14 = vpop.xlane.xlu1 %972 }
 0xab2   :  { %v975_v15 = vmul.f32 0.03125, %v973_v14 }
 0xab3   :  { %v970_v17 = vpop.xlane.xlu0 %969 }
 0xab4   :  { %v977_v18 = vsub.f32 %v967_v9, %v975_v15  ;;  %v974_v19 = vmul.f32 0.03125, %v970_v17 }
 0xab6   :  { %v976_v20 = vsub.f32 %v966_v12, %v974_v19  ;;  %v979_v21 = vmul.f32 %v977_v18, %v977_v18 }
 0xab8   :  { %v983_v22 = vsel %vm75_vm0, %v979_v21, 0.0  ;;  %v978_v23 = vmul.f32 %v976_v20, %v976_v20 }
 0xab9   :  { %984 = vadd.xlane.f32.xlu1 %v983_v22 }
 0xaba   :  { %v980_v24 = vsel %vm75_vm0, %v978_v23, 0.0 }
 0xabb   :  { %981 = vadd.xlane.f32.xlu0 %v980_v24 }
 0xb42   :  { %v985_v25 = vpop.xlane.xlu1 %984 }
 0xb43   :  { %v987_v16 = vmul.f32 0.03125, %v985_v25 }
 0xb44   :  { %v982_v26 = vpop.xlane.xlu0 %981 }
 0xb45   :  { %v989_v5 = vadd.f32 1e-05, %v987_v16  ;;  %v986_v2 = vmul.f32 0.03125, %v982_v26 }
 0xb47   :  { %1207 = vrsqrt.f32 %v989_v5  ;;  %v988_v27 = vadd.f32 1e-05, %v986_v2 }
 0xb49   :  { %1209 = vrsqrt.f32 %v988_v27 }
 0xb54   :  { %v1208_v31 = vpop.eup %1207 }
 0xb55   :  { %v993_v32 = vmul.f32 %v1208_v31, %v977_v18 }
 0xb56   :  { %v1210_v34 = vpop.eup %1209 }
 0xb57   :  { %v992_v35 = vmul.f32 %v1210_v34, %v976_v20  ;;  %v999_v36 = vmul.f32 %v997_v30, %v993_v32 }
 0xb59   :  { %v998_v37 = vmul.f32 %v997_v30, %v992_v35  ;;  %v1005_v38 = vadd.f32 %v1003_v33, %v999_v36 }
 0xb5b   :  { %v1004_v39 = vadd.f32 %v1003_v33, %v998_v37  ;;  %1007 = vst.msk [vmem:[#allocation7 + $0x8] sm:$0xff] %vm75_vm0, %v1005_v38 }
 0xb5d   :  { %1006 = vst.msk [vmem:[#allocation7] sm:$0xff] %vm75_vm0, %v1004_v39 }
 0xb5e   :  { %1262 = shalt.err (!%p1259_p0)
}
 0xb5f   :  { %1019 = dma.vmem_to_hbm [thread:$0]  %s1014_s24, 256, %s1390_s2, [#allocation4], %s1278_s12, %s1278_s12, %s1279_s13  }
 0xb60   :  { %1275 = dma.done.wait [#allocation4], 256  }
 0xb61   :  { %1276 = vsyncadd [#allocation4], 4294967040 }
 0xb62   :  { %1023 = vsyncpa [#allocation3], 1 }
 0xb63   :  { %1024 = vsyncpa [#allocation6], 1 }
 0xb64   :  { %1025 = vsyncpa [#allocation4], 1 }

</bundles_post_ra>
